<compile_context>
chip_gen: v7x
topology: tpu7x:2x2x1
jax: 0.10.0
libtpu: 0.0.40
codegen_flags: <defaults>
</compile_context>

<pallas_src>
import functools

import jax
import jax.numpy as jnp
from jax import lax
from jax.experimental import pallas as pl
from jax.experimental.pallas import tpu as pltpu

# Large finite negative (avoids exp(-inf - -inf) = NaN hazards flagged in review).
MASK_VALUE = -0.7 * float(jnp.finfo(jnp.float32).max)


# ---------------------------------------------------------------------------
# Kernel 1: fused Q/K/V projection  (one x @ [Wq|Wk|Wv] matmul, N = 3H wide)
# ---------------------------------------------------------------------------
def qkv_proj_kernel(x_ref, w_ref, q_ref, k_ref, v_ref):
    # x_ref: (T_r, C) input dtype; w_ref: (C, 3H) bf16; outputs: (T_r, H) bf16 each.
    C = x_ref.shape[-1]
    H = q_ref.shape[-1]
    x = x_ref[...].astype(jnp.bfloat16)
    kqv = jnp.dot(x, w_ref[...], preferred_element_type=jnp.float32)  # (T_r, 3H)
    scale = C ** (-0.5)  # PyTorch module uses C = n_embed (not head_size)
    q_ref[...] = (kqv[:, :H] * scale).astype(q_ref.dtype)   # fold scale into q (O(T*H))
    k_ref[...] = kqv[:, H:2 * H].astype(k_ref.dtype)
    v_ref[...] = kqv[:, 2 * H:].astype(v_ref.dtype)


# ---------------------------------------------------------------------------
# Kernel 2: flash-style causal attention with online softmax
# ---------------------------------------------------------------------------
def flash_attn_kernel(q_ref, k_ref, v_ref, o_ref, m_ref, l_ref, acc_ref):
    i = pl.program_id(1)   # query-tile index
    j = pl.program_id(2)   # kv-tile index (innermost, reduction axis)

    @pl.when(j == 0)
    def _init():
        m_ref[...] = jnp.full_like(m_ref, MASK_VALUE)
        l_ref[...] = jnp.zeros_like(l_ref)
        acc_ref[...] = jnp.zeros_like(acc_ref)

    def _online_softmax_update(apply_causal_mask):
        q = q_ref[...]                              # (T_blk, H) bf16, pre-scaled
        k = k_ref[...]                              # (T_blk, H) bf16
        # Q @ K^T without materializing k.T: contract the H dim of both operands.
        s = lax.dot_general(q, k, (((1,), (1,)), ((), ())),
                            preferred_element_type=jnp.float32)  # (T_blk, T_blk) f32
        if apply_causal_mask:  # static (Python) flag: iota mask only on diagonal tiles
            row = lax.broadcasted_iota(jnp.int32, s.shape, 0)
            col = lax.broadcasted_iota(jnp.int32, s.shape, 1)
            s = jnp.where(row >= col, s, MASK_VALUE)

        m_prev = m_ref[...]
        m_new = jnp.maximum(m_prev, jnp.max(s, axis=-1, keepdims=True))
        alpha = jnp.exp(m_prev - m_new)
        p = jnp.exp(s - m_new)                      # (T_blk, T_blk) f32
        l_ref[...] = alpha * l_ref[...] + jnp.sum(p, axis=-1, keepdims=True)
        acc_ref[...] = alpha * acc_ref[...] + jnp.dot(
            p.astype(v_ref.dtype), v_ref[...], preferred_element_type=jnp.float32)
        m_ref[...] = m_new

    # Strictly-below-diagonal tiles: fully unmasked, no iota/select needed.
    @pl.when(j < i)
    def _interior():
        _online_softmax_update(apply_causal_mask=False)

    # Diagonal tile: masked update, then finalize (it is the last processed kv tile
    # for this q tile; tiles with j > i are entirely above the causal diagonal).
    @pl.when(j == i)
    def _diag_and_finalize():
        _online_softmax_update(apply_causal_mask=True)
        inv_l = pl.reciprocal(l_ref[...], approx=True)   # EUP slot, otherwise idle
        o_ref[...] = (acc_ref[...] * inv_l).astype(o_ref.dtype)


# ---------------------------------------------------------------------------
# Wrapper
# ---------------------------------------------------------------------------
def head_forward(x, wk, wq, wv, *, block_t=128):
    """Single-head causal attention: x (B,T,C), wk/wq/wv (C,H) -> (B,T,H)."""
    B, T, C = x.shape
    H = wk.shape[1]
    # TODO(synk): for head_size < 128, fuse several heads into one kernel so the
    # output last dim stays lane-dense (a single Head module cannot do that).

    # Fused projection weight, columns ordered [q | k | v], bf16 for the MXU.
    w_kqv = jnp.concatenate([wq, wk, wv], axis=1).astype(jnp.bfloat16)

    T_blk = block_t if (T % block_t == 0) else T   # query == kv tile size
    n_t = T // T_blk

    # ---- Kernel 1: q, k, v = x @ [Wq|Wk|Wv] (q pre-scaled), bf16 outputs ----
    q, k, v = pl.pallas_call(
        qkv_proj_kernel,
        out_shape=(
            jax.ShapeDtypeStruct((B, T, H), jnp.bfloat16),
            jax.ShapeDtypeStruct((B, T, H), jnp.bfloat16),
            jax.ShapeDtypeStruct((B, T, H), jnp.bfloat16),
        ),
        grid_spec=pltpu.PrefetchScalarGridSpec(
            num_scalar_prefetch=0,
            grid=(B, n_t),
            in_specs=[
                pl.BlockSpec((None, T_blk, C), lambda b, r: (b, r, 0)),
                pl.BlockSpec((C, 3 * H), lambda b, r: (0, 0)),
            ],
            out_specs=[
                pl.BlockSpec((None, T_blk, H), lambda b, r: (b, r, 0)),
                pl.BlockSpec((None, T_blk, H), lambda b, r: (b, r, 0)),
                pl.BlockSpec((None, T_blk, H), lambda b, r: (b, r, 0)),
            ],
        ),
        compiler_params=pltpu.CompilerParams(
            dimension_semantics=("parallel", "parallel"),
            vmem_limit_bytes=32 * 1024 * 1024,
        ),
    )(x, w_kqv)

    # ---- Kernel 2: flash attention over (batch, q_tile, kv_tile) ----
    out = pl.pallas_call(
        flash_attn_kernel,
        out_shape=jax.ShapeDtypeStruct((B, T, H), x.dtype),
        grid_spec=pltpu.PrefetchScalarGridSpec(
            num_scalar_prefetch=0,
            grid=(B, n_t, n_t),
            in_specs=[
                pl.BlockSpec((None, T_blk, H), lambda b, i, j: (b, i, 0)),
                # Clamp j to i: causally-skipped kv tiles re-use the resident block,
                # so their DMA is elided.
                pl.BlockSpec((None, T_blk, H),
                             lambda b, i, j: (b, jnp.minimum(j, i), 0)),
                pl.BlockSpec((None, T_blk, H),
                             lambda b, i, j: (b, jnp.minimum(j, i), 0)),
            ],
            out_specs=pl.BlockSpec((None, T_blk, H), lambda b, i, j: (b, i, 0)),
            scratch_shapes=[
                pltpu.VMEM((T_blk, 1), jnp.float32),   # running max  m
                pltpu.VMEM((T_blk, 1), jnp.float32),   # running sum  l
                pltpu.VMEM((T_blk, H), jnp.float32),   # output accumulator
            ],
        ),
        compiler_params=pltpu.CompilerParams(
            dimension_semantics=("parallel", "parallel", "arbitrary"),
            vmem_limit_bytes=32 * 1024 * 1024,
        ),
    )(q, k, v)
    return out


# ---------------------------------------------------------------------------
# Pure-JAX reference (matches the PyTorch module's forward, f32 throughout)
# ---------------------------------------------------------------------------
def head_reference(x, wk, wq, wv):
    B, T, C = x.shape
    k = x @ wk
    q = x @ wq
    v = x @ wv
    wei = (q @ jnp.swapaxes(k, -2, -1)) * C ** (-0.5)
    mask = jnp.tril(jnp.ones((T, T), dtype=bool))
    wei = jnp.where(mask, wei, -jnp.inf)
    wei = jax.nn.softmax(wei, axis=-1)
    return wei @ v


if __name__ == "__main__":
    # Shapes consistent with the module: n_embed = 384, T = block_size = 256.
    # head_size = 128 chosen so q/k/v/output stores are lane-dense (multiple of 128).
    B, T, C, H = 2, 256, 384, 128

    key = jax.random.PRNGKey(0)
    kx, kk, kq, kv = jax.random.split(key, 4)
    x = jax.random.normal(kx, (B, T, C), dtype=jnp.float32)
    # nn.Linear(C, H, bias=False): weight stored here as (C, H) so projection is x @ W.
    wk = jax.random.normal(kk, (C, H), dtype=jnp.float32) * (C ** -0.5)
    wq = jax.random.normal(kq, (C, H), dtype=jnp.float32) * (C ** -0.5)
    wv = jax.random.normal(kv, (C, H), dtype=jnp.float32) * (C ** -0.5)

    out = head_forward(x, wk, wq, wv)
    out = jax.block_until_ready(out)

    ref = head_reference(x, wk, wq, wv)
    assert out.shape == (B, T, H)
    # bf16 MXU operands with f32 accumulation -> loosened (but still tight) tolerance.
    assert jnp.allclose(out, ref, atol=2e-2, rtol=2e-2), (
        f"mismatch vs reference: max abs err {jnp.max(jnp.abs(out - ref))}")

    print("KERNEL_OK")
</pallas_src>

<mosaic_0001>
module attributes {stable_mosaic.version = 11 : i64} {
  func.func @qkv_proj_kernel(%arg0: i32, %arg1: i32, %arg2: memref<1x128x384xf32, #tpu.memory_space<vmem>>, %arg3: memref<384x384xbf16, #tpu.memory_space<vmem>>, %arg4: memref<1x128x128xbf16, #tpu.memory_space<vmem>>, %arg5: memref<1x128x128xbf16, #tpu.memory_space<vmem>>, %arg6: memref<1x128x128xbf16, #tpu.memory_space<vmem>>) attributes {dimension_semantics = [#tpu.dimension_semantics<parallel>, #tpu.dimension_semantics<parallel>], iteration_bounds = array<i64: 2, 2>, scalar_prefetch = 0 : i64, scratch_operands = 0 : i64, tpu.core_type = #tpu.core_type<tc>, window_params = [{transform_indices = @transform_0, window_bounds = array<i64: 1, 128, 384>}, {pipeline_mode = #tpu.pipeline_mode<synchronous>, transform_indices = @transform_1, window_bounds = array<i64: 384, 384>}, {transform_indices = @transform_2, window_bounds = array<i64: 1, 128, 128>}, {transform_indices = @transform_3, window_bounds = array<i64: 1, 128, 128>}, {transform_indices = @transform_4, window_bounds = array<i64: 1, 128, 128>}]} {
    %c0 = arith.constant 0 : index
    %c0_0 = arith.constant 0 : index
    %c0_1 = arith.constant 0 : index
    %0 = vector.load %arg2[%c0, %c0_0, %c0_1] : memref<1x128x384xf32, #tpu.memory_space<vmem>>, vector<1x128x384xf32>
    %1 = vector.shape_cast %0 : vector<1x128x384xf32> to vector<128x384xf32>
    %2 = arith.truncf %1 : vector<128x384xf32> to vector<128x384xbf16>
    %c0_2 = arith.constant 0 : index
    %c0_3 = arith.constant 0 : index
    %3 = vector.load %arg3[%c0_2, %c0_3] : memref<384x384xbf16, #tpu.memory_space<vmem>>, vector<384x384xbf16>
    %cst = arith.constant dense<0.000000e+00> : vector<128x384xf32>
    %4 = tpu.matmul %2, %3, %cst {dimension_numbers = #tpu.dot_dimension_numbers<[1], [0], [0], [1], [0, 0, 1, 1], [], []>} : vector<128x384xbf16>, vector<384x384xbf16>, vector<128x384xf32> -> vector<128x384xf32>
    %5 = vector.extract_strided_slice %4 {offsets = [0, 0], sizes = [128, 128], strides = [1, 1]} : vector<128x384xf32> to vector<128x128xf32>
    %cst_4 = arith.constant 0.0510310382 : f32
    %6 = vector.broadcast %cst_4 : f32 to vector<128x128xf32>
    %7 = arith.mulf %5, %6 : vector<128x128xf32>
    %8 = arith.truncf %7 : vector<128x128xf32> to vector<128x128xbf16>
    %c0_5 = arith.constant 0 : index
    %c0_6 = arith.constant 0 : index
    %c0_7 = arith.constant 0 : index
    %9 = vector.load %arg4[%c0_5, %c0_6, %c0_7] : memref<1x128x128xbf16, #tpu.memory_space<vmem>>, vector<1x128x128xbf16>
    %10 = vector.shape_cast %9 : vector<1x128x128xbf16> to vector<128x128xbf16>
    %11 = vector.shape_cast %8 : vector<128x128xbf16> to vector<1x128x128xbf16>
    tpu.vector_store %arg4[%c0_5, %c0_6, %c0_7], %11 {strides = array<i32>} : memref<1x128x128xbf16, #tpu.memory_space<vmem>>, vector<1x128x128xbf16>,
    %12 = vector.extract_strided_slice %4 {offsets = [0, 128], sizes = [128, 128], strides = [1, 1]} : vector<128x384xf32> to vector<128x128xf32>
    %13 = arith.truncf %12 : vector<128x128xf32> to vector<128x128xbf16>
    %c0_8 = arith.constant 0 : index
    %c0_9 = arith.constant 0 : index
    %c0_10 = arith.constant 0 : index
    %14 = vector.load %arg5[%c0_8, %c0_9, %c0_10] : memref<1x128x128xbf16, #tpu.memory_space<vmem>>, vector<1x128x128xbf16>
    %15 = vector.shape_cast %14 : vector<1x128x128xbf16> to vector<128x128xbf16>
    %16 = vector.shape_cast %13 : vector<128x128xbf16> to vector<1x128x128xbf16>
    tpu.vector_store %arg5[%c0_8, %c0_9, %c0_10], %16 {strides = array<i32>} : memref<1x128x128xbf16, #tpu.memory_space<vmem>>, vector<1x128x128xbf16>,
    %17 = vector.extract_strided_slice %4 {offsets = [0, 256], sizes = [128, 128], strides = [1, 1]} : vector<128x384xf32> to vector<128x128xf32>
    %18 = arith.truncf %17 : vector<128x128xf32> to vector<128x128xbf16>
    %c0_11 = arith.constant 0 : index
    %c0_12 = arith.constant 0 : index
    %c0_13 = arith.constant 0 : index
    %19 = vector.load %arg6[%c0_11, %c0_12, %c0_13] : memref<1x128x128xbf16, #tpu.memory_space<vmem>>, vector<1x128x128xbf16>
    %20 = vector.shape_cast %19 : vector<1x128x128xbf16> to vector<128x128xbf16>
    %21 = vector.shape_cast %18 : vector<128x128xbf16> to vector<1x128x128xbf16>
    tpu.vector_store %arg6[%c0_11, %c0_12, %c0_13], %21 {strides = array<i32>} : memref<1x128x128xbf16, #tpu.memory_space<vmem>>, vector<1x128x128xbf16>,
    return
  }
  func.func @transform_0(%arg0: i32, %arg1: i32) -> (i32, i32, i32) {
    %c0_i32 = arith.constant 0 : i32
    %c0_i32_0 = arith.constant 0 : i32
    return %arg0, %arg1, %c0_i32 : i32, i32, i32
  }
  func.func @transform_1(%arg0: i32, %arg1: i32) -> (i32, i32) {
    %c0_i32 = arith.constant 0 : i32
    %c0_i32_0 = arith.constant 0 : i32
    %c0_i32_1 = arith.constant 0 : i32
    return %c0_i32, %c0_i32_0 : i32, i32
  }
  func.func @transform_2(%arg0: i32, %arg1: i32) -> (i32, i32, i32) {
    %c0_i32 = arith.constant 0 : i32
    %c0_i32_0 = arith.constant 0 : i32
    return %arg0, %arg1, %c0_i32 : i32, i32, i32
  }
  func.func @transform_3(%arg0: i32, %arg1: i32) -> (i32, i32, i32) {
    %c0_i32 = arith.constant 0 : i32
    %c0_i32_0 = arith.constant 0 : i32
    return %arg0, %arg1, %c0_i32 : i32, i32, i32
  }
  func.func @transform_4(%arg0: i32, %arg1: i32) -> (i32, i32, i32) {
    %c0_i32 = arith.constant 0 : i32
    %c0_i32_0 = arith.constant 0 : i32
    return %arg0, %arg1, %c0_i32 : i32, i32, i32
  }
}

</mosaic_0001>

<bundles_post_ra>
// kernel: tpu_custom_call.1
= control target key start
LH: loop header
LB: loop body
LE: loop exit
PB: predicated region body
PF: predicated region fallthrough
CT: control target
= control target key end

     0   :  { %s3260_s0 = inlined_call_operand.hbm [shape: f32[2,256,384], index: 0, kind: input, shape index: {}]   ;;  %s3261_s1 = inlined_call_operand.hbm [shape: bf16[384,384], index: 1, kind: input, shape index: {}]   ;;  %s3262_s2 = inlined_call_operand.hbm [shape: bf16[2,256,128], index: 2, kind: output, shape index: {0}]   ;;  %s3263_s3 = inlined_call_operand.hbm [shape: bf16[2,256,128], index: 3, kind: output, shape index: {1}]   ;;  %s3264_s4 = inlined_call_operand.hbm [shape: bf16[2,256,128], index: 4, kind: output, shape index: {2}]  }
   0x1   :  { %3273 = sst [smem:[#allocation19_spill]] %s3261_s1 }
   0x2   :  { %10 = vsyncpa [#allocation3], 0 }
   0x3   :  { %12 = vsyncpa [#allocation3 + $0x1], 0 }
   0x4   :  { %13 = vsyncpa [#allocation6], 0 }
   0x5   :  { %14 = vsyncpa [#allocation4], 0 }
   0x6   :  { %16 = vsyncpa [#allocation4 + $0x1], 0 }
   0x7   :  { %17 = vsyncpa [#allocation9], 0 }
   0x8   :  { %19 = vsyncpa [#allocation9 + $0x1], 0  ;;  %s2695_s15 = smov 0   ;;  %s2697_s16 = smov 0  }
   0x9   :  { %s2699_s17 = smov 0   ;;  %s2701_s18 = smov 0  }
   0xa   :  { %s2703_s19 = smov 0   ;;  %s2705_s20 = smov 0  }
   0xb   :  { %s2707_s21 = smov 0   ;;  %s2709_s22 = smov 0  }
   0xc LB: > { %3274 = sst [smem:[#allocation15_spill]] %s2648_s20  ;;  %s2736_s23 = sadd.s32 4294967295, %s2656_s22   ;;  %s2656_s22 = sphi %s2709_s22, %s25_s22   ;;  %s2652_s21 = sphi %s2707_s21, %s3300_s21   ;;  %s2648_s20 = sphi %s2705_s20, %s3294_s20   ;;  %s2644_s19 = sphi %s2703_s19, %s3299_s19   ;;  %s2640_s18 = sphi %s2701_s18, %s3293_s18   ;;  %s2636_s17 = sphi %s2699_s17, %s3298_s17   ;;  %s2632_s16 = sphi %s2697_s16, %s3297_s16   ;;  %s2628_s15 = sphi %s2695_s15, %s3296_s15  }
   0xd   : > { %s3268_s24 = sadd.s32 4294967294, %s2656_s22   ;;  %p59_p0 = scmp.ne.s32.totalorder %s2632_s16, %s2628_s15 }
   0xe   : > { %p3265_p1 = scmp.eq.s32.totalorder %s2736_s23, 0  ;;  %p112_p3 = scmp.eq.s32.totalorder %s3268_s24, 3 }
   0xf   : > { %p1736_p5 = scmp.ge.s32.totalorder %s2656_s22, 1  ;;  %p175_p7 = scmp.lt.s32.totalorder %s2656_s22, 5 }
  0x10   : > { %p2747_p4 = por %p3265_p1, %p59_p0  ;;  %p2752_p6 = por %p112_p3, %p59_p0 }
  0x11   : > { %p2757_p8 = pnand %p1736_p5, %p175_p7  ;;  %s2658_s28 = smov [#allocation5]  }
  0x12   : > { %s3275_s25 = scalar_select %p2747_p4, 1, 0 }
  0x13   : > { %s3276_s26 = scalar_select %p2752_p6, 1, 0 }
  0x14   : > { %s3278_s27 = scalar_select %p2757_p8, 1, 0 }
  0x15   : > { %3277 = sst [smem:[#allocation16_spill]] %s3276_s26  ;;  %s187_s29 = sshll.u32 %s2658_s28, 4  ;;  %s188_s29 = int_to_ptr.vmem [resolvable:$true] %s187_s29 }
  0x16   : > { %p2246_p9 = pneg %p2757_p8  ;;  %s3280_s1 = sld [smem:[#allocation19_spill]] }
  0x18   : > { %p2765_p10 = pnand %p2246_p9, %p3265_p1 }
  0x1a   : > { %p2438_p12 = pneg %p2765_p10 }
  0x1c   : > { %s2436_s7 = scalar_lea.hbm %s3280_s1, 9216 }
  0x1d   : > { %p2437_p11 = scmp.ne.s32.totalorder %s3280_s1, %s2436_s7  ;;  %p2443_p3 = scmp.lt.u32.totalorder %s2436_s7, %s3280_s1 }
  0x1f   : > { %p2439_p13 = pnand %p2438_p12, %p2437_p11 }
  0x21   : > { %p2440_p0 = pneg %p2439_p13 }
  0x23   : > { %p2445_p5 = pnand %p2443_p3, %p2440_p0 }
  0x25   : > { %2448 = shalt.err (!%p2445_p5)
}
  0x26   : > { %s2449_s12 = scalar_lea.vmem %s188_s29, 9216  ;;  %p2457_p2 = scmp.lt.s32.totalorder %s188_s29, %s188_s29 }
  0x27   : > { %p2450_p7 = scmp.ne.s32.totalorder %s188_s29, %s2449_s12  ;;  %p2458_p6 = scmp.lt.s32.totalorder %s2449_s12, %s2449_s12 }
  0x29   : > { %p2452_p9 = pnand %p2450_p7, %p2438_p12  ;;  %p2459_p4 = por %p2458_p6, %p2457_p2 }
  0x2b   : > { %p2453_p1 = pneg %p2452_p9 }
  0x2d   : > { %p2460_p8 = pnand %p2459_p4, %p2453_p1 }
  0x2f   : > { %2463 = shalt.err (!%p2460_p8)
}
  0x30   : > { %s2659_s13 = smov 192   ;;  %s2660_s14 = smov 12  }
  0x31   : > { %2249 = dma.hbm_to_vmem [thread:$0]  (!%p2765_p10), %s3280_s1, 9216, %s188_s29, [#allocation6], %s2659_s13, %s2659_s13, %s2660_s14  }
  0x32   : > { %s34_s6 = sadd.s32 1, %s2648_s20  ;;  %s37_s7 = sadd.s32 1, %s2652_s21 }
  0x33   : > { %p35_p1 = scmp.ge.s32.totalorder %s34_s6, 2  ;;  %s46_s8 = sadd.s32 1, %s2636_s17 }
  0x34   : > { %p53_p2 = scmp.ne.s32.totalorder %s2636_s17, %s2632_s16  ;;  %p54_p4 = scmp.eq.s32.totalorder %s2656_s22, 0 }
  0x35   : > { %s3302_s6 = smov (%p35_p1, %s34_s6), 0  ;;  %s3304_s7 = smov (!%p35_p1, %s37_s7), %s2652_s21 }
  0x36   : > { %3281 = sst [smem:[#allocation17_spill]] %s3302_s6  ;;  %s42_s9 = ssub.s32 %s2648_s20, %s3302_s6 }
  0x37   : > { %p39_p6 = scmp.ge.s32.totalorder %s3304_s7, 2  ;;  %p3282_p8 = scmp.eq.s32.totalorder %s2736_s23, 3 }
  0x38   : > { %p55_p10 = por %p54_p4, %p53_p2  ;;  %p2265_p12 = scmp.lt.s32.totalorder %s2656_s22, 4 }
  0x39   : > { %p2798_p11 = por %p3282_p8, %p53_p2  ;;  %s3306_s7 = smov (%p39_p6, %s3304_s7), 0 }
  0x3a   : > { %3284 = sst [smem:[#allocation18_spill]] %s3306_s7  ;;  %s201_s29 = sand.u32 1, %s2636_s17  }
  0x3b   : > { %s2231_s10 = smul.u32 48, %s2648_s20  ;;  %s41_s11 = ssub.s32 %s2652_s21, %s3306_s7 }
  0x3c   : > { %s43_s12 = sor.u32 %s42_s9, %s41_s11  ;;  %s2230_s13 = smul.u32 384, %s201_s29 }
  0x3d   : > { %p44_p13 = scmp.eq.s32.totalorder %s43_s12, 0  ;;  %s2232_s14 = smul.u32 96, %s2652_s21 }
  0x3e   : > { %p2810_p0 = pnand %p2265_p12, %p55_p10  ;;  %s205_s1 = scalar_lea.vmem [#allocation2], %s2230_s13 }
  0x3f   : > { %s2815_s5 = scalar_select %p44_p13, %s2636_s17, %s46_s8  }
  0x40   : > { %s212_s24 = sadd.s32 %s2232_s14, %s2231_s10  ;;  %s215_s6 = sshll.u32 %s205_s1, 4  ;;  %s2817_s6 = int_to_ptr.vmem [resolvable:$true] %s215_s6 }
  0x41   : > { %s1741_s26 = sshll.u32 %s212_s24, 7  ;;  %s2824_s11 = scalar_lea.sflag [#allocation3], %s201_s29 }
  0x42   : > { %s2822_s9 = scalar_lea.hbm %s3260_s0, %s1741_s26  ;;  %p2466_p5 = pneg %p2810_p0 }
  0x43   : > { %s2464_s12 = scalar_lea.hbm %s2822_s9, 6144  ;;  %s2469_s20 = scalar_lea.hbm %s3260_s0, 24576 }
  0x44   : > { %p2465_p3 = scmp.ne.s32.totalorder %s2822_s9, %s2464_s12  ;;  %p2470_p1 = scmp.lt.u32.totalorder %s2822_s9, %s3260_s0 }
  0x45   : > { %p2471_p2 = scmp.lt.u32.totalorder %s2469_s20, %s2464_s12  ;;  %p2473_p6 = scmp.lt.u32.totalorder %s2464_s12, %s2822_s9 }
  0x46   : > { %p2467_p7 = pnand %p2466_p5, %p2465_p3 }
  0x47   : > { %p2472_p4 = por %p2471_p2, %p2470_p1 }
  0x48   : > { %p2468_p9 = pneg %p2467_p7 }
  0x49   : > { %p2474_p8 = por %p2473_p6, %p2472_p4 }
  0x4b   : > { %p2475_p10 = pnand %p2474_p8, %p2468_p9 }
  0x4d   : > { %2478 = shalt.err (!%p2475_p10)
}
  0x4e   : > { %s2479_s8 = scalar_lea.vmem %s2817_s6, 6144  ;;  %s2661_s29 = smov [#allocation2]  }
  0x4f   : > { %p2480_p12 = scmp.ne.s32.totalorder %s2817_s6, %s2479_s8  ;;  %s2484_s10 = sshll.u32 %s2661_s29, 4  ;;  %s2485_s10 = int_to_ptr.vmem [resolvable:$false] %s2484_s10 }
  0x50   : > { %s2486_s13 = scalar_lea.vmem %s2485_s10, 12288  ;;  %p2487_p7 = scmp.lt.s32.totalorder %s2817_s6, %s2485_s10 }
  0x51   : > { %p2482_p13 = pnand %p2480_p12, %p2466_p5  ;;  %p2488_p1 = scmp.lt.s32.totalorder %s2486_s13, %s2479_s8 }
  0x53   : > { %p2483_p3 = pneg %p2482_p13  ;;  %p2489_p2 = por %p2488_p1, %p2487_p7 }
  0x55   : > { %p2490_p4 = pnand %p2489_p2, %p2483_p3 }
  0x57   : > { %2493 = shalt.err (!%p2490_p4)
}
  0x58   : > { %s2662_s14 = smov 384   ;;  %s2663_s12 = smov 24  }
  0x59   : > { %2253 = dma.hbm_to_vmem [thread:$0]  (!%p2810_p0), %s2822_s9, 6144, %s2817_s6, %s2824_s11, %s2662_s14, %s2662_s14, %s2663_s12  }
  0x5a   : > { %p3286_p5 = scmp.ne.s32.totalorder %s3278_s27, 0 }
  0x5b   : > { %s2855_s1 = sand.u32 (!%p3286_p5), 1, %s2632_s16   ;;  %p3287_p9 = scmp.ne.s32.totalorder (!%p3286_p5), %s3275_s25, 0 }
  0x5c   : > { %227 = sbr.rel (%p3286_p5) target bundleno = 539 (0x21b), region = 28  ;;  %s230_s20 = scalar_lea.sflag (!%p3286_p5), [#allocation3], %s2855_s1 }
  0x5d   : > { %s2233_s24 = smul.u32 (!%p3286_p5), 384, %s2855_s1 }
  0x5f   : > { %s2859_s26 = scalar_lea.vmem (!%p3286_p5), [#allocation2], %s2233_s24 }
  0x63   : > { %2611 = dma.done.wait (%p3287_p9), %s230_s20, 6144  }
  0x64   : > { %2613 = vsyncadd (%p3287_p9), %s230_s20, 4294961152  ;;  %p3288_p0 = scmp.eq.s32.totalorder %s2736_s23, 0 }
  0x66   : > { %2615 = dma.done.wait (%p3288_p0), [#allocation6], 9216   ;;  %p3289_p6 = pmov %p3288_p0 }
  0x67   : > { %v2664_v0 = vmov 0   ;;  %v2340_v1 = vld [vmem:[#allocation5 + $0x4] ss:$12 sps:$4 sm:$0xff]   ;;  %v2344_v3 = vld [vmem:[#allocation5] ss:$12 sps:$4 sm:$0xff]   ;;  %v312_v45 = vld [vmem:[%s2859_s26 + $0x118] sm:$0xff] }
  0x68   : > { %2617 = vsyncadd (%p3289_p6), [#allocation6], 4294958080  ;;  %1014 = vmatprep.mubr.bf16.mxu1 %v2664_v0  ;;  %v2870_v2 = vld [vmem:[#allocation5 + $0x184] ss:$12 sps:$4 sm:$0xff]   ;;  %829 = vmatprep.subr.bf16.mxu0 %v2340_v1  ;;  %v2872_v4 = vld [vmem:[#allocation5 + $0x180] ss:$12 sps:$4 sm:$0xff]  }
  0x69   : > { %2182 = vmatprep.subr.bf16.mxu1 %v2870_v2  ;;  %v2346_v5 = vld [vmem:[#allocation5 + $0x1c] ss:$12 sps:$4 sm:$0xff]   ;;  %830 = vmatpush1.bf16.msra.mxu0 %v2344_v3  ;;  %v2350_v7 = vld [vmem:[#allocation5 + $0x18] ss:$12 sps:$4 sm:$0xff]   ;;  %v2352_v9 = vld [vmem:[#allocation5 + $0x34] ss:$12 sps:$4 sm:$0xff]  }
  0x6a   : > { %2190 = vmatpush1.bf16.msra.mxu1 %v2872_v4  ;;  %v2876_v6 = vld [vmem:[#allocation5 + $0x19c] ss:$12 sps:$4 sm:$0xff]   ;;  %831 = vmatprep.subr.bf16.mxu0 %v2346_v5  ;;  %v2878_v8 = vld [vmem:[#allocation5 + $0x198] ss:$12 sps:$4 sm:$0xff]   ;;  %v2881_v10 = vld [vmem:[#allocation5 + $0x1b4] ss:$12 sps:$4 sm:$0xff]  }
  0x6b   : > { %2183 = vmatprep.subr.bf16.mxu1 %v2876_v6  ;;  %v2356_v11 = vld [vmem:[#allocation5 + $0x30] ss:$12 sps:$4 sm:$0xff]   ;;  %v2358_v13 = vld [vmem:[#allocation5 + $0x4c] ss:$12 sps:$4 sm:$0xff]   ;;  %v2362_v15 = vld [vmem:[#allocation5 + $0x48] ss:$12 sps:$4 sm:$0xff]  }
  0x6c   : > { %v2883_v12 = vld [vmem:[#allocation5 + $0x1b0] ss:$12 sps:$4 sm:$0xff]   ;;  %v2887_v14 = vld [vmem:[#allocation5 + $0x1cc] ss:$12 sps:$4 sm:$0xff]   ;;  %v2890_v16 = vld [vmem:[#allocation5 + $0x1c8] ss:$12 sps:$4 sm:$0xff]  }
  0x6d   : > { %832 = vmatpush1.bf16.msra.mxu0 %v2350_v7  ;;  %v2364_v17 = vld [vmem:[#allocation5 + $0x64] ss:$12 sps:$4 sm:$0xff]   ;;  %v2368_v19 = vld [vmem:[#allocation5 + $0x60] ss:$12 sps:$4 sm:$0xff]   ;;  %v2370_v21 = vld [vmem:[#allocation5 + $0x7c] ss:$12 sps:$4 sm:$0xff]  }
  0x6e   : > { %2191 = vmatpush1.bf16.msra.mxu1 %v2878_v8  ;;  %833 = vmatprep.subr.bf16.mxu0 %v2352_v9  ;;  %v2893_v18 = vld [vmem:[#allocation5 + $0x1e4] ss:$12 sps:$4 sm:$0xff]   ;;  %v2895_v20 = vld [vmem:[#allocation5 + $0x1e0] ss:$12 sps:$4 sm:$0xff]   ;;  %v2899_v22 = vld [vmem:[#allocation5 + $0x1fc] ss:$12 sps:$4 sm:$0xff]  }
  0x6f   : > { %2184 = vmatprep.subr.bf16.mxu1 %v2881_v10  ;;  %v2374_v23 = vld [vmem:[#allocation5 + $0x78] ss:$12 sps:$4 sm:$0xff]   ;;  %v2376_v25 = vld [vmem:[#allocation5 + $0x94] ss:$12 sps:$4 sm:$0xff]   ;;  %v2380_v27 = vld [vmem:[#allocation5 + $0x90] ss:$12 sps:$4 sm:$0xff]  }
  0x70   : > { %v2902_v24 = vld [vmem:[#allocation5 + $0x1f8] ss:$12 sps:$4 sm:$0xff]   ;;  %v2905_v26 = vld [vmem:[#allocation5 + $0x214] ss:$12 sps:$4 sm:$0xff]   ;;  %v2907_v28 = vld [vmem:[#allocation5 + $0x210] ss:$12 sps:$4 sm:$0xff]  }
  0x71   : > { %834 = vmatpush1.bf16.msra.mxu0 %v2356_v11  ;;  %v2382_v29 = vld [vmem:[#allocation5 + $0xac] ss:$12 sps:$4 sm:$0xff]   ;;  %v2386_v31 = vld [vmem:[#allocation5 + $0xa8] ss:$12 sps:$4 sm:$0xff]   ;;  %v2388_v35 = vld [vmem:[#allocation5 + $0xc4] ss:$12 sps:$4 sm:$0xff]  }
  0x72   : > { %2192 = vmatpush1.bf16.msra.mxu1 %v2883_v12  ;;  %835 = vmatprep.subr.bf16.mxu0 %v2358_v13  ;;  %v2911_v30 = vld [vmem:[#allocation5 + $0x22c] ss:$12 sps:$4 sm:$0xff]   ;;  %v2913_v32 = vld [vmem:[#allocation5 + $0x228] ss:$12 sps:$4 sm:$0xff]   ;;  %v309_v44 = vld [vmem:[%s2859_s26 + $0x100] sm:$0xff]  ;;  %s3046_s25 = sshll.u32 %s2855_s1, 6 }
  0x73   : > { %2185 = vmatprep.subr.bf16.mxu1 %v2887_v14  ;;  %v303_v33 = vld [vmem:[%s2859_s26 + $0xd0] sm:$0xff]  ;;  %v306_v34 = vld [vmem:[%s2859_s26 + $0xe8] sm:$0xff]  ;;  %v2396_v42 = vld [vmem:[#allocation5 + $0xd8] ss:$12 sps:$4 sm:$0xff]   ;;  %v2926_v49 = vpack.c.bf16 %v312_v45, %v309_v44  ;;  %s3051_s27 = scalar_lea.vmem [#allocation8], %s3046_s25  ;;  %s3055_s6 = scalar_lea.vmem [#allocation7], %s3046_s25 }
  0x74   : > { %v2390_v36 = vld [vmem:[#allocation5 + $0xc8] ss:$12 sps:$4 sm:$0xff]   ;;  %v2919_v37 = vpack.c.bf16 %v306_v34, %v303_v33  ;;  %v2391_v38 = vld [vmem:[#allocation5 + $0xc0] ss:$12 sps:$4 sm:$0xff]   ;;  %v2400_v47 = vld [vmem:[#allocation5 + $0xf8] ss:$12 sps:$4 sm:$0xff]  }
  0x75   : > { %836 = vmatpush1.bf16.msra.mxu0 %v2362_v15  ;;  %v2392_v39 = vld [vmem:[#allocation5 + $0x8] ss:$12 sps:$4 sm:$0xff]   ;;  %v2395_v41 = vld [vmem:[#allocation5 + $0xe0] ss:$12 sps:$4 sm:$0xff]   ;;  %v2401_v48 = vld [vmem:[#allocation5 + $0xf0] ss:$12 sps:$4 sm:$0xff]  }
  0x76   : > { %2193 = vmatpush1.bf16.msra.mxu1 %v2890_v16  ;;  %837 = vmatprep.subr.bf16.mxu0 %v2364_v17  ;;  %v2393_v40 = vld [vmem:[#allocation5 + $0xdc] ss:$12 sps:$4 sm:$0xff]   ;;  %v2397_v43 = vld [vmem:[#allocation5 + $0x20] ss:$12 sps:$4 sm:$0xff]   ;;  %v2402_v50 = vld [vmem:[#allocation5 + $0x38] ss:$12 sps:$4 sm:$0xff]  }
  0x77   : > { %2186 = vmatprep.subr.bf16.mxu1 %v2893_v18  ;;  %v2398_v46 = vld [vmem:[#allocation5 + $0xf4] ss:$12 sps:$4 sm:$0xff]   ;;  %v2403_v51 = vld [vmem:[#allocation5 + $0x10c] ss:$12 sps:$4 sm:$0xff]   ;;  %v2405_v52 = vld [vmem:[#allocation5 + $0x110] ss:$12 sps:$4 sm:$0xff]  }
  0x78   : > { %v2406_v53 = vld [vmem:[#allocation5 + $0x108] ss:$12 sps:$4 sm:$0xff]   ;;  %v2407_v54 = vld [vmem:[#allocation5 + $0x50] ss:$12 sps:$4 sm:$0xff]   ;;  %v2411_v60 = vld [vmem:[#allocation5 + $0x120] ss:$12 sps:$4 sm:$0xff]  }
  0x79   : > { %838 = vmatpush1.bf16.msra.mxu0 %v2368_v19  ;;  %v2408_v55 = vld [vmem:[#allocation5 + $0x124] ss:$12 sps:$4 sm:$0xff]   ;;  %v318_v57 = vld [vmem:[%s2859_s26 + $0x148] sm:$0xff]  ;;  %v324_v11 = vld [vmem:[%s2859_s26 + $0x178] sm:$0xff]  ;;  %s3094_s28 = scalar_lea.vmem [#allocation10], %s3046_s25  ;;  %s1870_s9 = sshll.u32 %s2640_s18, 4 }
  0x7a   : > { %2194 = vmatpush1.bf16.msra.mxu1 %v2895_v20  ;;  %839 = vmatprep.subr.bf16.mxu0 %v2370_v21  ;;  %v315_v56 = vld [vmem:[%s2859_s26 + $0x130] sm:$0xff]  ;;  %v2413_v62 = vld [vmem:[#allocation5 + $0x13c] ss:$12 sps:$4 sm:$0xff]   ;;  %v2415_v63 = vld [vmem:[#allocation5 + $0x140] ss:$12 sps:$4 sm:$0xff]   ;;  %s1871_s11 = sshll.u32 %s2644_s19, 5 }
  0x7b   : > { %2187 = vmatprep.subr.bf16.mxu1 %v2899_v22  ;;  %v2410_v58 = vld [vmem:[#allocation5 + $0x128] ss:$12 sps:$4 sm:$0xff]   ;;  %v2932_v59 = vpack.c.bf16 %v318_v57, %v315_v56  ;;  %v2416_v1 = vld [vmem:[#allocation5 + $0x138] ss:$12 sps:$4 sm:$0xff]   ;;  %v2417_v5 = vld [vmem:[#allocation5 + $0x80] ss:$12 sps:$4 sm:$0xff]   ;;  %s1528_s18 = sadd.s32 %s1871_s11, %s1870_s9 }
  0x7c   : > { %v2412_v61 = vld [vmem:[#allocation5 + $0x68] ss:$12 sps:$4 sm:$0xff]   ;;  %v321_v7 = vld [vmem:[%s2859_s26 + $0x160] sm:$0xff]  ;;  %v2421_v21 = vld [vmem:[#allocation5 + $0x150] ss:$12 sps:$4 sm:$0xff]   ;;  %s1510_s19 = sand.u32 1, %s2736_s23  }
  0x7d   : > { %840 = vmatpush1.bf16.msra.mxu0 %v2374_v23  ;;  %v278_v3 = vld [vmem:[%s2859_s26 + $0x8] sm:$0xff]  ;;  %v281_v9 = vld [vmem:[%s2859_s26 + $0x20] sm:$0xff]  ;;  %v2940_v19 = vpack.c.bf16 %v324_v11, %v321_v7  ;;  %v280_v34 = vld [vmem:[%s2859_s26 + $0x18] sm:$0xff]  ;;  %s1531_s7 = sshll.u32 %s3055_s6, 4  ;;  %s1549_s8 = sshll.u32 %s3051_s27, 4  ;;  %s3122_s7 = int_to_ptr.vmem [resolvable:$true] %s1531_s7  ;;  %s3124_s8 = int_to_ptr.vmem [resolvable:$true] %s1549_s8 }
  0x7e   : > { %2195 = vmatpush1.bf16.msra.mxu1 %v2902_v24  ;;  %841 = vmatprep.subr.bf16.mxu0 %v2376_v25  ;;  %v326_v13 = vpack.c.bf16 %v281_v9, %v278_v3  ;;  %v2418_v15 = vld [vmem:[#allocation5 + $0x154] ss:$12 sps:$4 sm:$0xff]   ;;  %v2420_v17 = vld [vmem:[#allocation5 + $0x158] ss:$12 sps:$4 sm:$0xff]   ;;  %v290_v44 = vld [vmem:[%s2859_s26 + $0x68] sm:$0xff]  ;;  %s1567_s29 = sshll.u32 %s3094_s28, 4  ;;  %s3138_s29 = int_to_ptr.vmem [resolvable:$true] %s1567_s29 }
  0x7f   : > { %2188 = vmatprep.subr.bf16.mxu1 %v2905_v26  ;;  %v2422_v23 = vld [vmem:[#allocation5 + $0x98] ss:$12 sps:$4 sm:$0xff]   ;;  %v2435_v57 = vld [vmem:[#allocation5 + $0x230] ss:$12 sps:$4 sm:$0xff]   ;;  %s1872_s10 = sshll.u32 %s1528_s18, 6  ;;  %s3150_s18 = scalar_lea.sflag [#allocation9], %s1510_s19 }
  0x80   : > { %861 = vmatprep.mubr.bf16.mxu0 %v326_v13  ;;  %v2423_v25 = vld [vmem:[#allocation5 + $0x16c] ss:$12 sps:$4 sm:$0xff]   ;;  %v277_v33 = vld [vmem:[%s2859_s26] sm:$0xff]  ;;  %v323_v7 = vld [vmem:[%s2859_s26 + $0x170] sm:$0xff]  ;;  %s3131_s12 = scalar_lea.hbm %s3263_s3, %s1872_s10  ;;  %s3144_s11 = scalar_lea.hbm %s3264_s4, %s1872_s10 }
  0x81   : > { %842 = vmatpush1.bf16.msra.mxu0 %v2380_v27  ;;  %v2425_v27 = vld [vmem:[#allocation5 + $0x170] ss:$12 sps:$4 sm:$0xff]   ;;  %v293_v45 = vld [vmem:[%s2859_s26 + $0x80] sm:$0xff]  ;;  %s2494_s13 = scalar_lea.vmem %s3124_s8, 1024  ;;  %s2665_s14 = smov [#allocation8]  }
  0x82   : > { %2196 = vmatpush1.bf16.msra.mxu1 %v2907_v28  ;;  %843 = vmatprep.subr.bf16.mxu0 %v2382_v29  ;;  %v2426_v29 = vld [vmem:[#allocation5 + $0x168] ss:$12 sps:$4 sm:$0xff]   ;;  %v305_v56 = vld [vmem:[%s2859_s26 + $0xe0] sm:$0xff]  ;;  %v316_v3 = vld [vmem:[%s2859_s26 + $0x138] sm:$0xff]  ;;  %p2495_p8 = scmp.ne.s32.totalorder %s3124_s8, %s2494_s13  ;;  %s2498_s24 = sshll.u32 %s2665_s14, 4  ;;  %s2499_s24 = int_to_ptr.vmem [resolvable:$false] %s2498_s24 }
  0x83   : > { %2189 = vmatprep.subr.bf16.mxu1 %v2911_v30  ;;  %p2501_p13 = scmp.lt.s32.totalorder %s3124_s8, %s2499_s24 }
  0x84   : > { %p2496_p10 = pnand %p2495_p8, %p2798_p11 }
  0x85   : > { %844 = vmatpush1.bf16.msra.mxu0 %v2386_v31  ;;  %v2427_v31 = vld [vmem:[#allocation5 + $0xb0] ss:$12 sps:$4 sm:$0xff]  }
  0x86   : > { %2197 = vmatpush1.bf16.msra.mxu1 %v2913_v32  ;;  %845 = vmatprep.subr.bf16.mxu0 %v2388_v35  ;;  %v2428_v35 = vld [vmem:[#allocation5 + $0x188] ss:$12 sps:$4 sm:$0xff]   ;;  %p2497_p12 = pneg %p2496_p10 }
  0x87   : > { %2070 = vmatprep.subr.bf16.mxu1 %v2390_v36  ;;  %v284_v36 = vld [vmem:[%s2859_s26 + $0x38] sm:$0xff] }
  0x89   : > { %1015 = vmatmul.mubr.bf16.vlgmr.msra.gmra.mrb[0].mxu1 %v2919_v37  ;;  %846 = vmatpush1.bf16.msra.mxu0 %v2391_v38  ;;  %v287_v38 = vld [vmem:[%s2859_s26 + $0x50] sm:$0xff] }
  0x8a   : > { %2071 = vmatpush3.bf16.msra.mxu1 %v2392_v39  ;;  %847 = vmatprep.subr.bf16.mxu0 %v2393_v40  ;;  %v325_v39 = vpack.c.bf16 %v280_v34, %v277_v33  ;;  %v329_v40 = vpack.c.bf16 %v287_v38, %v284_v36  ;;  %v294_v33 = vld [vmem:[%s2859_s26 + $0x88] sm:$0xff]  ;;  %v297_v36 = vld [vmem:[%s2859_s26 + $0xa0] sm:$0xff]  ;;  %v300_v38 = vld [vmem:[%s2859_s26 + $0xb8] sm:$0xff] }
  0x8b   : > { %2072 = vmatprep.subr.bf16.mxu1 %v2395_v41  ;;  %1024 = vmatprep.mubr.bf16.mxu1 %v2664_v0  ;;  %v2429_v41 = vld [vmem:[#allocation5 + $0x1a0] ss:$12 sps:$4 sm:$0xff]  }
  0x8d   : > { %848 = vmatpush1.bf16.msra.mxu0 %v2396_v42  ;;  %v283_v42 = vld [vmem:[%s2859_s26 + $0x30] sm:$0xff] }
  0x8e   : > { %2073 = vmatpush3.bf16.msra.mxu1 %v2397_v43  ;;  %849 = vmatprep.subr.bf16.mxu0 %v2398_v46  ;;  %v286_v43 = vld [vmem:[%s2859_s26 + $0x48] sm:$0xff]  ;;  %v2430_v46 = vld [vmem:[#allocation5 + $0x1b8] ss:$12 sps:$4 sm:$0xff]  }
  0x8f   : > { %2074 = vmatprep.subr.bf16.mxu1 %v2400_v47  ;;  %v332_v47 = vpack.c.bf16 %v293_v45, %v290_v44 }
  0x91   : > { %1025 = vmatmul.mubr.bf16.gmra.mrb[4].mxu1 %v2926_v49  ;;  %850 = vmatpush1.bf16.msra.mxu0 %v2401_v48  ;;  %v289_v48 = vld [vmem:[%s2859_s26 + $0x60] sm:$0xff] }
  0x92   : > { %2075 = vmatpush3.bf16.msra.mxu1 %v2402_v50  ;;  %851 = vmatprep.subr.bf16.mxu0 %v2403_v51  ;;  %v292_v50 = vld [vmem:[%s2859_s26 + $0x78] sm:$0xff]  ;;  %v299_v51 = vld [vmem:[%s2859_s26 + $0xb0] sm:$0xff] }
  0x93   : > { %2076 = vmatprep.subr.bf16.mxu1 %v2405_v52  ;;  %1034 = vmatprep.mubr.bf16.mxu1 %v2664_v0 }
  0x95   : > { %852 = vmatpush1.bf16.msra.mxu0 %v2406_v53  ;;  %v2433_v53 = vld [vmem:[#allocation5 + $0x200] ss:$12 sps:$4 sm:$0xff]  }
  0x96   : > { %2077 = vmatpush3.bf16.msra.mxu1 %v2407_v54  ;;  %853 = vmatprep.subr.bf16.mxu0 %v2408_v55  ;;  %v298_v54 = vld [vmem:[%s2859_s26 + $0xa8] sm:$0xff] }
  0x97   : > { %2078 = vmatprep.subr.bf16.mxu1 %v2410_v58  ;;  %v302_v55 = vld [vmem:[%s2859_s26 + $0xc8] sm:$0xff]  ;;  %v304_v58 = vld [vmem:[%s2859_s26 + $0xd8] sm:$0xff] }
  0x99   : > { %1035 = vmatmul.mubr.bf16.gmra.mrb[8].mxu1 %v2932_v59  ;;  %854 = vmatpush1.bf16.msra.mxu0 %v2411_v60  ;;  %v311_v60 = vld [vmem:[%s2859_s26 + $0x110] sm:$0xff] }
  0x9a   : > { %2079 = vmatpush3.bf16.msra.mxu1 %v2412_v61  ;;  %855 = vmatprep.subr.bf16.mxu0 %v2413_v62  ;;  %v307_v61 = vld [vmem:[%s2859_s26 + $0xf0] sm:$0xff]  ;;  %v310_v62 = vld [vmem:[%s2859_s26 + $0x108] sm:$0xff] }
  0x9b   : > { %2080 = vmatprep.subr.bf16.mxu1 %v2415_v63  ;;  %1044 = vmatprep.mubr.bf16.mxu1 %v2664_v0  ;;  %v314_v63 = vld [vmem:[%s2859_s26 + $0x128] sm:$0xff] }
  0x9d   : > { %856 = vmatpush1.bf16.msra.mxu0 %v2416_v1  ;;  %v340_v1 = vpack.c.bf16 %v310_v62, %v307_v61 }
  0x9e   : > { %2081 = vmatpush3.bf16.msra.mxu1 %v2417_v5  ;;  %857 = vmatprep.subr.bf16.mxu0 %v2418_v15  ;;  %v320_v5 = vld [vmem:[%s2859_s26 + $0x158] sm:$0xff]  ;;  %v322_v15 = vld [vmem:[%s2859_s26 + $0x168] sm:$0xff] }
  0x9f   : > { %2082 = vmatprep.subr.bf16.mxu1 %v2420_v17  ;;  %v347_v11 = vpack.c.bf16 %v323_v7, %v320_v5  ;;  %v279_v17 = vld [vmem:[%s2859_s26 + $0x10] sm:$0xff] }
  0xa1   : > { %1045 = vmatmul.mubr.bf16.gmra.mrb[12].mxu1 %v2940_v19  ;;  %858 = vmatpush1.bf16.msra.mxu0 %v2421_v21  ;;  %v282_v21 = vld [vmem:[%s2859_s26 + $0x28] sm:$0xff] }
  0xa2   : > { %2083 = vmatpush3.bf16.msra.mxu1 %v2422_v23  ;;  %859 = vmatprep.subr.bf16.mxu0 %v2423_v25  ;;  %v327_v25 = vpack.c.bf16 %v282_v21, %v279_v17 }
  0xa3   : > { %2084 = vmatprep.subr.bf16.mxu1 %v2425_v27  ;;  %1087 = vmatprep.mubr.bf16.mxu1 %v326_v13  ;;  %v319_v13 = vld [vmem:[%s2859_s26 + $0x150] sm:$0xff]  ;;  %v285_v27 = vld [vmem:[%s2859_s26 + $0x40] sm:$0xff] }
  0xa4   : > { %v346_v23 = vpack.c.bf16 %v322_v15, %v319_v13 }
  0xa5   : > { %860 = vmatpush1.bf16.msra.mxu0 %v2426_v29  ;;  %v288_v29 = vld [vmem:[%s2859_s26 + $0x58] sm:$0xff] }
  0xa6   : > { %2085 = vmatpush3.bf16.msra.mxu1 %v2427_v31  ;;  %942 = vmatprep.subr.bf16.mxu0 %v2870_v2  ;;  %v328_v2 = vpack.c.bf16 %v286_v43, %v283_v42  ;;  %v291_v31 = vld [vmem:[%s2859_s26 + $0x70] sm:$0xff]  ;;  %v330_v34 = vpack.c.bf16 %v288_v29, %v285_v27 }
  0xa7   : > { %2150 = vmatprep.subr.bf16.mxu1 %v2428_v35 }
  0xa8   : > { %862 = vmatmul.mubr.bf16.vlgmr.msra.gmra.mrb[0].mxu0 %v325_v39 }
  0xa9   : > { %1088 = vmatmul.mubr.bf16.vlgmr.msra.gmra.mrb[16].mxu1 %v325_v39  ;;  %943 = vmatpush1.bf16.msra.mxu0 %v2872_v4  ;;  %v2431_v4 = vld [vmem:[#allocation5 + $0x1d0] ss:$12 sps:$4 sm:$0xff]   ;;  %v336_v39 = vpack.c.bf16 %v300_v38, %v297_v36 }
  0xaa   : > { %2151 = vmatpush3.bf16.msra.mxu1 %v2428_v35  ;;  %871 = vmatprep.mubr.bf16.mxu0 %v329_v40  ;;  %v333_v35 = vpack.c.bf16 %v294_v33, %v291_v31 }
  0xab   : > { %1095 = vmatprep.mubr.bf16.mxu1 %v329_v40  ;;  %2152 = vmatprep.subr.bf16.mxu1 %v2429_v41 }
  0xac   : > { %944 = vmatprep.subr.bf16.mxu0 %v2876_v6  ;;  %v296_v6 = vld [vmem:[%s2859_s26 + $0x98] sm:$0xff] }
  0xad   : > { %945 = vmatpush1.bf16.msra.mxu0 %v2878_v8  ;;  %v2432_v8 = vld [vmem:[#allocation5 + $0x1e8] ss:$12 sps:$4 sm:$0xff]   ;;  %v335_v52 = vpack.c.bf16 %v299_v51, %v296_v6 }
  0xae   : > { %2153 = vmatpush3.bf16.msra.mxu1 %v2429_v41  ;;  %946 = vmatprep.subr.bf16.mxu0 %v2881_v10  ;;  %v331_v10 = vpack.c.bf16 %v292_v50, %v289_v48 }
  0xaf   : > { %2154 = vmatprep.subr.bf16.mxu1 %v2430_v46 }
  0xb0   : > { %872 = vmatmul.mubr.bf16.gmra.mrb[4].mxu0 %v328_v2 }
  0xb1   : > { %1096 = vmatmul.mubr.bf16.gmra.mrb[20].mxu1 %v328_v2  ;;  %881 = vmatprep.mubr.bf16.mxu0 %v332_v47 }
  0xb2   : > { %1103 = vmatprep.mubr.bf16.mxu1 %v332_v47  ;;  %2155 = vmatpush3.bf16.msra.mxu1 %v2430_v46 }
  0xb3   : > { %947 = vmatpush1.bf16.msra.mxu0 %v2883_v12  ;;  %2156 = vmatprep.subr.bf16.mxu1 %v2431_v4  ;;  %v295_v12 = vld [vmem:[%s2859_s26 + $0x90] sm:$0xff] }
  0xb4   : > { %948 = vmatprep.subr.bf16.mxu0 %v2887_v14  ;;  %v2434_v14 = vld [vmem:[#allocation5 + $0x218] ss:$12 sps:$4 sm:$0xff]  }
  0xb6   : > { %2157 = vmatpush3.bf16.msra.mxu1 %v2431_v4 }
  0xb7   : > { %949 = vmatpush1.bf16.msra.mxu0 %v2890_v16  ;;  %2158 = vmatprep.subr.bf16.mxu1 %v2432_v8  ;;  %v334_v16 = vpack.c.bf16 %v298_v54, %v295_v12 }
  0xb8   : > { %950 = vmatprep.subr.bf16.mxu0 %v2893_v18  ;;  %882 = vmatmul.mubr.bf16.gmra.mrb[8].mxu0 %v331_v10  ;;  %v338_v18 = vpack.c.bf16 %v305_v56, %v302_v55 }
  0xb9   : > { %1104 = vmatmul.mubr.bf16.gmra.mrb[24].mxu1 %v331_v10  ;;  %891 = vmatprep.mubr.bf16.mxu0 %v335_v52 }
  0xba   : > { %1111 = vmatprep.mubr.bf16.mxu1 %v335_v52  ;;  %2159 = vmatpush3.bf16.msra.mxu1 %v2432_v8 }
  0xbb   : > { %951 = vmatpush1.bf16.msra.mxu0 %v2895_v20  ;;  %2160 = vmatprep.subr.bf16.mxu1 %v2433_v53  ;;  %v301_v20 = vld [vmem:[%s2859_s26 + $0xc0] sm:$0xff] }
  0xbc   : > { %952 = vmatprep.subr.bf16.mxu0 %v2899_v22  ;;  %v308_v22 = vld [vmem:[%s2859_s26 + $0xf8] sm:$0xff] }
  0xbe   : > { %2161 = vmatpush3.bf16.msra.mxu1 %v2433_v53 }
  0xbf   : > { %953 = vmatpush1.bf16.msra.mxu0 %v2902_v24  ;;  %2162 = vmatprep.subr.bf16.mxu1 %v2434_v14  ;;  %v337_v24 = vpack.c.bf16 %v304_v58, %v301_v20 }
  0xc0   : > { %954 = vmatprep.subr.bf16.mxu0 %v2905_v26  ;;  %892 = vmatmul.mubr.bf16.gmra.mrb[12].mxu0 %v334_v16  ;;  %v341_v26 = vpack.c.bf16 %v311_v60, %v308_v22 }
  0xc1   : > { %1112 = vmatmul.mubr.bf16.gmra.mrb[28].mxu1 %v334_v16  ;;  %901 = vmatprep.mubr.bf16.mxu0 %v338_v18 }
  0xc2   : > { %1119 = vmatprep.mubr.bf16.mxu1 %v338_v18  ;;  %2163 = vmatpush3.bf16.msra.mxu1 %v2434_v14 }
  0xc3   : > { %955 = vmatpush1.bf16.msra.mxu0 %v2907_v28  ;;  %2164 = vmatprep.subr.bf16.mxu1 %v2435_v57  ;;  %v317_v28 = vld [vmem:[%s2859_s26 + $0x140] sm:$0xff] }
  0xc4   : > { %956 = vmatprep.subr.bf16.mxu0 %v2911_v30  ;;  %v344_v30 = vpack.c.bf16 %v317_v28, %v314_v63 }
  0xc6   : > { %2165 = vmatpush3.bf16.msra.mxu1 %v2435_v57 }
  0xc7   : > { %957 = vmatpush1.bf16.msra.mxu0 %v2913_v32  ;;  %v313_v32 = vld [vmem:[%s2859_s26 + $0x120] sm:$0xff]  ;;  %s3136_s26 = scalar_lea.hbm %s3262_s2, %s1872_s10 }
  0xc8   : > { %902 = vmatmul.mubr.bf16.gmra.mrb[16].mxu0 %v337_v24  ;;  %v343_v9 = vpack.c.bf16 %v316_v3, %v313_v32 }
  0xc9   : > { %1120 = vmatmul.mubr.bf16.gmra.mrb[32].mxu1 %v337_v24  ;;  %911 = vmatprep.mubr.bf16.mxu0 %v341_v26 }
  0xca   : > { %1127 = vmatprep.mubr.bf16.mxu1 %v341_v26 }
  0xd0   : > { %912 = vmatmul.mubr.bf16.gmra.mrb[20].mxu0 %v340_v1 }
  0xd1   : > { %1128 = vmatmul.mubr.bf16.gmra.mrb[36].mxu1 %v340_v1  ;;  %921 = vmatprep.mubr.bf16.mxu0 %v344_v30 }
  0xd2   : > { %1135 = vmatprep.mubr.bf16.mxu1 %v344_v30 }
  0xd8   : > { %922 = vmatmul.mubr.bf16.gmra.mrb[24].mxu0 %v343_v9 }
  0xd9   : > { %1136 = vmatmul.mubr.bf16.gmra.mrb[40].mxu1 %v343_v9  ;;  %931 = vmatprep.mubr.bf16.mxu0 %v347_v11 }
  0xda   : > { %1143 = vmatprep.mubr.bf16.mxu1 %v347_v11 }
  0xe0   : > { %932 = vmatmul.mubr.bf16.gmra.mrb[28].mxu0 %v346_v23 }
  0xe1   : > { %1144 = vmatmul.mubr.bf16.gmra.mrb[44].mxu1 %v346_v23  ;;  %974 = vmatprep.mubr.bf16.mxu0 %v2664_v0 }
  0xe2   : > { %2166 = vmatprep.mubr.bf16.mxu1 %v327_v25 }
  0xe8   : > { %975 = vmatmul.mubr.bf16.vlgmr.msra.gmra.mrb[0].mxu0 %v327_v25 }
  0xe9   : > { %2167 = vmatmul.mubr.bf16.vlgmr.msra.gmra.mrb[48].mxu1 %v330_v34  ;;  %984 = vmatprep.mubr.bf16.mxu0 %v2664_v0 }
  0xea   : > { %2170 = vmatprep.mubr.bf16.mxu1 %v333_v35 }
  0xf0   : > { %985 = vmatmul.mubr.bf16.gmra.mrb[4].mxu0 %v330_v34 }
  0xf1   : > { %2171 = vmatmul.mubr.bf16.gmra.mrb[52].mxu1 %v336_v39  ;;  %994 = vmatprep.mubr.bf16.mxu0 %v2664_v0 }
  0xf2   : > { %2174 = vmatprep.mubr.bf16.mxu1 %v2919_v37 }
  0xf8   : > { %995 = vmatmul.mubr.bf16.gmra.mrb[8].mxu0 %v333_v35 }
  0xf9   : > { %2175 = vmatmul.mubr.bf16.gmra.mrb[56].mxu1 %v2926_v49  ;;  %1004 = vmatprep.mubr.bf16.mxu0 %v2664_v0 }
  0xfa   : > { %2178 = vmatprep.mubr.bf16.mxu1 %v2932_v59 }
 0x100   : > { %1005 = vmatmul.mubr.bf16.gmra.mrb[12].mxu0 %v336_v39 }
 0x101   : > { %2179 = vmatmul.mubr.bf16.gmra.mrb[60].mxu1 %v2940_v19 }
 0x15c   : > { %v1016_v40 = vpop.f32.mrb[0].mxu1 }
 0x15d   : > { %v1018_v41 = vpop.f32.mrb[1].mxu1 }
 0x15e   : > { %v1020_v42 = vpop.f32.mrb[2].mxu1 }
 0x15f   : > { %v1022_v43 = vpop.f32.mrb[3].mxu1 }
 0x164   : > { %v1026_v44 = vpop.f32.mrb[4].mxu1 }
 0x165   : > { %v3005_v45 = vpop.f32.mrb[5].mxu1 }
 0x166   : > { %v3007_v46 = vpop.f32.mrb[6].mxu1 }
 0x167   : > { %v3009_v37 = vpop.f32.mrb[7].mxu1 }
 0x16c   : > { %v3011_v2 = vpop.f32.mrb[8].mxu1 }
 0x16d   : > { %v3013_v49 = vpop.f32.mrb[9].mxu1 }
 0x16e   : > { %v3015_v0 = vpop.f32.mrb[10].mxu1 }
 0x16f   : > { %v3017_v59 = vpop.f32.mrb[11].mxu1 }
 0x174   : > { %v3019_v19 = vpop.f32.mrb[12].mxu1 }
 0x175   : > { %v3021_v47 = vpop.f32.mrb[13].mxu1 }
 0x176   : > { %v3023_v4 = vpop.f32.mrb[14].mxu1 }
 0x177   : > { %v3025_v48 = vpop.f32.mrb[15].mxu1 }
 0x17c   : > { %v2086_v50 = vpop.f32.mrb[16].mxu1 }
 0x17d   : > { %v2087_v6 = vpop.f32.mrb[17].mxu1 }
 0x17e   : > { %v3027_v51 = vadd.f32 %v2087_v6, %v2086_v50  ;;  %v2089_v8 = vpop.f32.mrb[18].mxu1 }
 0x17f   : > { %v2090_v10 = vpop.f32.mrb[19].mxu1 }
 0x180   : > { %v3029_v52 = vadd.f32 %v2090_v10, %v2089_v8 }
 0x184   : > { %v2092_v53 = vpop.f32.mrb[20].mxu1 }
 0x185   : > { %v2093_v12 = vpop.f32.mrb[21].mxu1 }
 0x186   : > { %v3031_v54 = vadd.f32 %v2093_v12, %v2092_v53  ;;  %v2095_v55 = vpop.f32.mrb[22].mxu1 }
 0x187   : > { %v2096_v56 = vpop.f32.mrb[23].mxu1 }
 0x188   : > { %v3033_v14 = vadd.f32 %v2096_v56, %v2095_v55 }
 0x18c   : > { %v2098_v16 = vpop.f32.mrb[24].mxu1 }
 0x18d   : > { %v2099_v18 = vpop.f32.mrb[25].mxu1 }
 0x18e   : > { %v3035_v57 = vadd.f32 %v2099_v18, %v2098_v16  ;;  %v2101_v20 = vpop.f32.mrb[26].mxu1 }
 0x18f   : > { %v2102_v58 = vpop.f32.mrb[27].mxu1 }
 0x190   : > { %v3037_v22 = vadd.f32 %v2102_v58, %v2101_v20 }
 0x194   : > { %v2104_v60 = vpop.f32.mrb[28].mxu1 }
 0x195   : > { %v2105_v24 = vpop.f32.mrb[29].mxu1 }
 0x196   : > { %v3039_v26 = vadd.f32 %v2105_v24, %v2104_v60  ;;  %v2107_v61 = vpop.f32.mrb[30].mxu1 }
 0x197   : > { %v2108_v62 = vpop.f32.mrb[31].mxu1 }
 0x198   : > { %v3041_v63 = vadd.f32 %v2108_v62, %v2107_v61 }
 0x19b   : > { %v903_v28 = vpop.f32.mrb[16].mxu0 }
 0x19c   : > { %v2110_v1 = vpop.f32.mrb[32].mxu1  ;;  %v1017_v30 = vadd.f32 %v1016_v40, %v903_v28  ;;  %v905_v32 = vpop.f32.mrb[17].mxu0 }
 0x19d   : > { %v2111_v3 = vpop.f32.mrb[33].mxu1  ;;  %v1019_v5 = vadd.f32 %v1018_v41, %v905_v32  ;;  %v907_v9 = vpop.f32.mrb[18].mxu0 }
 0x19e   : > { %v3043_v7 = vadd.f32 %v2111_v3, %v2110_v1  ;;  %v2113_v11 = vpop.f32.mrb[34].mxu1  ;;  %v1021_v13 = vadd.f32 %v1020_v42, %v907_v9  ;;  %v909_v15 = vpop.f32.mrb[19].mxu0  ;;  %v1257_v25 = vmul.f32 0.05103104, %v1017_v30 }
 0x19f   : > { %v2114_v17 = vpop.f32.mrb[35].mxu1  ;;  %v1023_v21 = vadd.f32 %v1022_v43, %v909_v15 }
 0x1a0   : > { %v3048_v23 = vadd.f32 %v2114_v17, %v2113_v11  ;;  %v1258_v27 = vmul.f32 0.05103104, %v1021_v13 }
 0x1a1   : > { %v1992_v29 = vpack.c.bf16 %v1023_v21, %v1019_v5 }
 0x1a2   : > { %v1952_v31 = vpack.c.bf16 %v1258_v27, %v1257_v25 }
 0x1a3   : > { %2059 = vst [vmem:[%s3051_s27 + $0x20] sm:$0xff] %v1992_v29   ;;  %v913_v33 = vpop.f32.mrb[20].mxu0 }
 0x1a4   : > { %v2116_v34 = vpop.f32.mrb[36].mxu1  ;;  %2052 = vst [vmem:[%s3055_s6 + $0x20] sm:$0xff] %v1952_v31   ;;  %v1027_v35 = vadd.f32 %v1026_v44, %v913_v33  ;;  %v915_v36 = vpop.f32.mrb[21].mxu0 }
 0x1a5   : > { %v2117_v38 = vpop.f32.mrb[37].mxu1  ;;  %v1029_v39 = vadd.f32 %v3005_v45, %v915_v36  ;;  %v917_v41 = vpop.f32.mrb[22].mxu0 }
 0x1a6   : > { %v3059_v40 = vadd.f32 %v2117_v38, %v2116_v34  ;;  %v2119_v42 = vpop.f32.mrb[38].mxu1  ;;  %v1031_v43 = vadd.f32 %v3007_v46, %v917_v41  ;;  %v919_v50 = vpop.f32.mrb[23].mxu0  ;;  %v1259_v53 = vmul.f32 0.05103104, %v1027_v35 }
 0x1a7   : > { %v2120_v6 = vpop.f32.mrb[39].mxu1  ;;  %v1033_v8 = vadd.f32 %v3009_v37, %v919_v50 }
 0x1a8   : > { %v3063_v10 = vadd.f32 %v2120_v6, %v2119_v42  ;;  %v1260_v44 = vmul.f32 0.05103104, %v1031_v43 }
 0x1a9   : > { %v1997_v12 = vpack.c.bf16 %v1033_v8, %v1029_v39 }
 0x1aa   : > { %v1957_v55 = vpack.c.bf16 %v1260_v44, %v1259_v53 }
 0x1ab   : > { %2060 = vst [vmem:[%s3051_s27 + $0x28] sm:$0xff] %v1997_v12   ;;  %v923_v56 = vpop.f32.mrb[24].mxu0 }
 0x1ac   : > { %v2122_v45 = vpop.f32.mrb[40].mxu1  ;;  %2053 = vst [vmem:[%s3055_s6 + $0x28] sm:$0xff] %v1957_v55   ;;  %v1037_v16 = vadd.f32 %v3011_v2, %v923_v56  ;;  %v925_v18 = vpop.f32.mrb[25].mxu0 }
 0x1ad   : > { %v2123_v20 = vpop.f32.mrb[41].mxu1  ;;  %v1039_v46 = vadd.f32 %v3013_v49, %v925_v18  ;;  %v927_v37 = vpop.f32.mrb[26].mxu0 }
 0x1ae   : > { %v3069_v58 = vadd.f32 %v2123_v20, %v2122_v45  ;;  %v2125_v60 = vpop.f32.mrb[42].mxu1  ;;  %v1041_v24 = vadd.f32 %v3015_v0, %v927_v37  ;;  %v929_v61 = vpop.f32.mrb[27].mxu0  ;;  %v1261_v30 = vmul.f32 0.05103104, %v1037_v16 }
 0x1af   : > { %v2126_v62 = vpop.f32.mrb[43].mxu1  ;;  %v1043_v28 = vadd.f32 %v3017_v59, %v929_v61 }
 0x1b0   : > { %v3073_v1 = vadd.f32 %v2126_v62, %v2125_v60  ;;  %v1262_v2 = vmul.f32 0.05103104, %v1041_v24 }
 0x1b1   : > { %v2002_v32 = vpack.c.bf16 %v1043_v28, %v1039_v46 }
 0x1b2   : > { %v1962_v3 = vpack.c.bf16 %v1262_v2, %v1261_v30 }
 0x1b3   : > { %2061 = vst [vmem:[%s3051_s27 + $0x30] sm:$0xff] %v2002_v32   ;;  %v933_v5 = vpop.f32.mrb[28].mxu0 }
 0x1b4   : > { %v2128_v49 = vpop.f32.mrb[44].mxu1  ;;  %2054 = vst [vmem:[%s3055_s6 + $0x30] sm:$0xff] %v1962_v3   ;;  %v1047_v9 = vadd.f32 %v3019_v19, %v933_v5  ;;  %v935_v11 = vpop.f32.mrb[29].mxu0 }
 0x1b5   : > { %v2129_v13 = vpop.f32.mrb[45].mxu1  ;;  %v1049_v0 = vadd.f32 %v3021_v47, %v935_v11  ;;  %v937_v59 = vpop.f32.mrb[30].mxu0 }
 0x1b6   : > { %v3079_v15 = vadd.f32 %v2129_v13, %v2128_v49  ;;  %v2131_v17 = vpop.f32.mrb[46].mxu1  ;;  %v1051_v21 = vadd.f32 %v3023_v4, %v937_v59  ;;  %v939_v25 = vpop.f32.mrb[31].mxu0  ;;  %v1263_v33 = vmul.f32 0.05103104, %v1047_v9 }
 0x1b7   : > { %v2132_v27 = vpop.f32.mrb[47].mxu1  ;;  %v1053_v29 = vadd.f32 %v3025_v48, %v939_v25 }
 0x1b8   : > { %v3083_v31 = vadd.f32 %v2132_v27, %v2131_v17  ;;  %v1264_v19 = vmul.f32 0.05103104, %v1051_v21 }
 0x1b9   : > { %v2007_v34 = vpack.c.bf16 %v1053_v29, %v1049_v0 }
 0x1ba   : > { %v1967_v35 = vpack.c.bf16 %v1264_v19, %v1263_v33 }
 0x1bb   : > { %2062 = vst [vmem:[%s3051_s27 + $0x38] sm:$0xff] %v2007_v34   ;;  %v976_v36 = vpop.f32.mrb[0].mxu0 }
 0x1bc   : > { %v2168_v47 = vpop.f32.mrb[48].mxu1  ;;  %2055 = vst [vmem:[%s3055_s6 + $0x38] sm:$0xff] %v1967_v35   ;;  %v978_v39 = vpop.f32.mrb[1].mxu0  ;;  %v1249_v43 = vmul.f32 0.05103104, %v976_v36 }
 0x1bd   : > { %v1195_v38 = vadd.f32 %v2168_v47, %v3031_v54  ;;  %v1186_v4 = vpop.f32.mrb[49].mxu1  ;;  %v980_v48 = vpop.f32.mrb[2].mxu0 }
 0x1be   : > { %v1187_v41 = vadd.f32 %v3027_v51, %v1186_v4  ;;  %v2169_v42 = vpop.f32.mrb[50].mxu1  ;;  %v1250_v50 = vmul.f32 0.05103104, %v980_v48  ;;  %v982_v8 = vpop.f32.mrb[3].mxu0 }
 0x1bf   : > { %v1198_v6 = vadd.f32 %v2169_v42, %v3033_v14  ;;  %v1189_v53 = vpop.f32.mrb[51].mxu1  ;;  %v1972_v44 = vpack.c.bf16 %v982_v8, %v978_v39 }
 0x1c0   : > { %v1190_v12 = vadd.f32 %v3029_v52, %v1189_v53  ;;  %v1932_v55 = vpack.c.bf16 %v1250_v50, %v1249_v43 }
 0x1c1   : > { %v2017_v56 = vpack.c.bf16 %v1198_v6, %v1195_v38  ;;  %1973 = vst [vmem:[%s3051_s27] sm:$0xff] %v1972_v44  }
 0x1c2   : > { %v2012_v54 = vpack.c.bf16 %v1190_v12, %v1187_v41  ;;  %1933 = vst [vmem:[%s3055_s6] sm:$0xff] %v1932_v55  }
 0x1c3   : > { %2063 = vst [vmem:[%s3094_s28 + $0x8] sm:$0xff] %v2017_v56   ;;  %v986_v51 = vpop.f32.mrb[4].mxu0 }
 0x1c4   : > { %2013 = vst [vmem:[%s3094_s28] sm:$0xff] %v2012_v54   ;;  %v2172_v45 = vpop.f32.mrb[52].mxu1  ;;  %v988_v16 = vpop.f32.mrb[5].mxu0  ;;  %v1251_v37 = vmul.f32 0.05103104, %v986_v51 }
 0x1c5   : > { %v1211_v14 = vadd.f32 %v2172_v45, %v3039_v26  ;;  %v1202_v18 = vpop.f32.mrb[53].mxu1  ;;  %v990_v20 = vpop.f32.mrb[6].mxu0 }
 0x1c6   : > { %v1203_v52 = vadd.f32 %v3035_v57, %v1202_v18  ;;  %v2173_v46 = vpop.f32.mrb[54].mxu1  ;;  %v1252_v60 = vmul.f32 0.05103104, %v990_v20  ;;  %v992_v61 = vpop.f32.mrb[7].mxu0 }
 0x1c7   : > { %v1214_v24 = vadd.f32 %v2173_v46, %v3041_v63  ;;  %v1205_v62 = vpop.f32.mrb[55].mxu1  ;;  %v1977_v28 = vpack.c.bf16 %v992_v61, %v988_v16 }
 0x1c8   : > { %v1206_v30 = vadd.f32 %v3037_v22, %v1205_v62  ;;  %v1937_v26 = vpack.c.bf16 %v1252_v60, %v1251_v37 }
 0x1c9   : > { %v2027_v2 = vpack.c.bf16 %v1214_v24, %v1211_v14  ;;  %2056 = vst [vmem:[%s3051_s27 + $0x8] sm:$0xff] %v1977_v28  }
 0x1ca   : > { %v2022_v32 = vpack.c.bf16 %v1206_v30, %v1203_v52  ;;  %2049 = vst [vmem:[%s3055_s6 + $0x8] sm:$0xff] %v1937_v26  }
 0x1cb   : > { %2065 = vst [vmem:[%s3094_s28 + $0x18] sm:$0xff] %v2027_v2   ;;  %v996_v57 = vpop.f32.mrb[8].mxu0 }
 0x1cc   : > { %2064 = vst [vmem:[%s3094_s28 + $0x10] sm:$0xff] %v2022_v32   ;;  %v2176_v3 = vpop.f32.mrb[56].mxu1  ;;  %v998_v49 = vpop.f32.mrb[9].mxu0  ;;  %v1253_v13 = vmul.f32 0.05103104, %v996_v57 }
 0x1cd   : > { %v1227_v5 = vadd.f32 %v2176_v3, %v3059_v40  ;;  %v1218_v63 = vpop.f32.mrb[57].mxu1  ;;  %v1000_v11 = vpop.f32.mrb[10].mxu0 }
 0x1ce   : > { %v1219_v9 = vadd.f32 %v3043_v7, %v1218_v63  ;;  %v2177_v22 = vpop.f32.mrb[58].mxu1  ;;  %v1254_v0 = vmul.f32 0.05103104, %v1000_v11  ;;  %v1002_v40 = vpop.f32.mrb[11].mxu0 }
 0x1cf   : > { %v1230_v59 = vadd.f32 %v2177_v22, %v3063_v10  ;;  %v1221_v17 = vpop.f32.mrb[59].mxu1  ;;  %v1982_v21 = vpack.c.bf16 %v1002_v40, %v998_v49 }
 0x1d0   : > { %v1222_v7 = vadd.f32 %v3048_v23, %v1221_v17  ;;  %v1942_v25 = vpack.c.bf16 %v1254_v0, %v1253_v13 }
 0x1d1   : > { %v2037_v27 = vpack.c.bf16 %v1230_v59, %v1227_v5  ;;  %2057 = vst [vmem:[%s3051_s27 + $0x10] sm:$0xff] %v1982_v21  }
 0x1d2   : > { %v2032_v29 = vpack.c.bf16 %v1222_v7, %v1219_v9  ;;  %2050 = vst [vmem:[%s3055_s6 + $0x10] sm:$0xff] %v1942_v25  }
 0x1d3   : > { %2067 = vst [vmem:[%s3094_s28 + $0x28] sm:$0xff] %v2037_v27   ;;  %v1006_v33 = vpop.f32.mrb[12].mxu0 }
 0x1d4   : > { %2066 = vst [vmem:[%s3094_s28 + $0x20] sm:$0xff] %v2032_v29   ;;  %v2180_v19 = vpop.f32.mrb[60].mxu1  ;;  %v1008_v34 = vpop.f32.mrb[13].mxu0  ;;  %v1255_v38 = vmul.f32 0.05103104, %v1006_v33 }
 0x1d5   : > { %v1243_v10 = vadd.f32 %v2180_v19, %v3079_v15  ;;  %v1234_v35 = vpop.f32.mrb[61].mxu1  ;;  %v1010_v36 = vpop.f32.mrb[14].mxu0 }
 0x1d6   : > { %v1235_v23 = vadd.f32 %v3069_v58, %v1234_v35  ;;  %v2181_v47 = vpop.f32.mrb[62].mxu1  ;;  %v1256_v39 = vmul.f32 0.05103104, %v1010_v36  ;;  %v1012_v15 = vpop.f32.mrb[15].mxu0 }
 0x1d7   : > { %v1246_v4 = vadd.f32 %v2181_v47, %v3083_v31  ;;  %v1237_v41 = vpop.f32.mrb[63].mxu1  ;;  %v1987_v58 = vpack.c.bf16 %v1012_v15, %v1008_v34 }
 0x1d8   : > { %v1238_v48 = vadd.f32 %v3073_v1, %v1237_v41  ;;  %v1947_v42 = vpack.c.bf16 %v1256_v39, %v1255_v38 }
 0x1d9   : > { %v2047_v43 = vpack.c.bf16 %v1246_v4, %v1243_v10  ;;  %2058 = vst [vmem:[%s3051_s27 + $0x18] sm:$0xff] %v1987_v58   ;;  %s2500_s27 = scalar_lea.vmem %s2499_s24, 2048 }
 0x1da   : > { %v2042_v31 = vpack.c.bf16 %v1238_v48, %v1235_v23  ;;  %2051 = vst [vmem:[%s3055_s6 + $0x18] sm:$0xff] %v1947_v42   ;;  %p2502_p3 = scmp.lt.s32.totalorder %s2500_s27, %s2494_s13 }
 0x1db   : > { %2069 = vst [vmem:[%s3094_s28 + $0x38] sm:$0xff] %v2047_v43  }
 0x1dc   : > { %p2503_p7 = por %p2502_p3, %p2501_p13 }
 0x1de   : > { %p2504_p1 = pnand %p2503_p7, %p2497_p12 }
 0x1e0   : > { %2507 = shalt.err (!%p2504_p1)
}
 0x1e1   : > { %s2508_s23 = scalar_lea.hbm %s3131_s12, 1024  ;;  %s2512_s10 = scalar_lea.hbm %s3263_s3, 4096 }
 0x1e2   : > { %p2509_p2 = scmp.ne.s32.totalorder %s3131_s12, %s2508_s23  ;;  %p2513_p9 = scmp.lt.u32.totalorder %s3131_s12, %s3263_s3 }
 0x1e3   : > { %p2514_p0 = scmp.lt.u32.totalorder %s2512_s10, %s2508_s23  ;;  %p2516_p8 = scmp.lt.u32.totalorder %s2508_s23, %s3131_s12 }
 0x1e4   : > { %p2510_p4 = pnand %p2509_p2, %p2798_p11 }
 0x1e5   : > { %p2515_p6 = por %p2514_p0, %p2513_p9 }
 0x1e6   : > { %p2511_p5 = pneg %p2510_p4 }
 0x1e7   : > { %p2517_p10 = por %p2516_p8, %p2515_p6 }
 0x1e9   : > { %p2518_p12 = pnand %p2517_p10, %p2511_p5 }
 0x1eb   : > { %2521 = shalt.err (!%p2518_p12)
}
 0x1ec   : > { %s2666_s9 = smov 64   ;;  %s2667_s13 = smov 4   ;;  %2068 = vst [vmem:[%s3094_s28 + $0x30] sm:$0xff] %v2042_v31  }
 0x1ed   : > { %2241 = dma.vmem_to_hbm [thread:$0]  (%p2798_p11), %s3124_s8, 1024, %s3131_s12, %s3150_s18, %s2666_s9, %s2666_s9, %s2667_s13  }
 0x1ee   : > { %s1506_s14 = scalar_lea.sflag [#allocation4], %s2855_s1  ;;  %s2522_s24 = scalar_lea.vmem %s3122_s7, 1024 }
 0x1ef   : > { %p2523_p13 = scmp.ne.s32.totalorder %s3122_s7, %s2522_s24  ;;  %s2668_s27 = smov [#allocation7]  }
 0x1f0   : > { %s2526_s23 = sshll.u32 %s2668_s27, 4  ;;  %s2527_s23 = int_to_ptr.vmem [resolvable:$false] %s2526_s23 }
 0x1f1   : > { %p2524_p3 = pnand %p2523_p13, %p2798_p11  ;;  %s2528_s6 = scalar_lea.vmem %s2527_s23, 2048 }
 0x1f2   : > { %p2529_p1 = scmp.lt.s32.totalorder %s3122_s7, %s2527_s23  ;;  %p2530_p2 = scmp.lt.s32.totalorder %s2528_s6, %s2522_s24 }
 0x1f3   : > { %p2525_p7 = pneg %p2524_p3 }
 0x1f4   : > { %p2531_p4 = por %p2530_p2, %p2529_p1 }
 0x1f6   : > { %p2532_p5 = pnand %p2531_p4, %p2525_p7 }
 0x1f8   : > { %2535 = shalt.err (!%p2532_p5)
}
 0x1f9   : > { %s2536_s28 = scalar_lea.hbm %s3136_s26, 1024  ;;  %s2540_s19 = scalar_lea.hbm %s3262_s2, 4096 }
 0x1fa   : > { %p2537_p9 = scmp.ne.s32.totalorder %s3136_s26, %s2536_s28  ;;  %p2541_p8 = scmp.lt.u32.totalorder %s3136_s26, %s3262_s2 }
 0x1fb   : > { %p2542_p10 = scmp.lt.u32.totalorder %s2540_s19, %s2536_s28  ;;  %p2544_p13 = scmp.lt.u32.totalorder %s2536_s28, %s3136_s26 }
 0x1fc   : > { %p2538_p0 = pnand %p2537_p9, %p2798_p11 }
 0x1fd   : > { %p2543_p12 = por %p2542_p10, %p2541_p8 }
 0x1fe   : > { %p2539_p6 = pneg %p2538_p0 }
 0x1ff   : > { %p2545_p3 = por %p2544_p13, %p2543_p12 }
 0x201   : > { %p2546_p7 = pnand %p2545_p3, %p2539_p6 }
 0x203   : > { %2549 = shalt.err (!%p2546_p7)
}
 0x204   : > { %2240 = dma.vmem_to_hbm [thread:$0]  (%p2798_p11), %s3122_s7, 1024, %s3136_s26, %s1506_s14, %s2666_s9, %s2666_s9, %s2667_s13  }
 0x205   : > { %s2550_s25 = scalar_lea.vmem %s3138_s29, 1024  ;;  %s2669_s24 = smov [#allocation10]  }
 0x206   : > { %p2551_p1 = scmp.ne.s32.totalorder %s3138_s29, %s2550_s25  ;;  %s2554_s27 = sshll.u32 %s2669_s24, 4  ;;  %s2555_s27 = int_to_ptr.vmem [resolvable:$false] %s2554_s27 }
 0x207   : > { %s2556_s23 = scalar_lea.vmem %s2555_s27, 2048  ;;  %p2557_p5 = scmp.lt.s32.totalorder %s3138_s29, %s2555_s27 }
 0x208   : > { %p2552_p2 = pnand %p2551_p1, %p2798_p11  ;;  %p2558_p9 = scmp.lt.s32.totalorder %s2556_s23, %s2550_s25 }
 0x20a   : > { %p2553_p4 = pneg %p2552_p2  ;;  %p2559_p0 = por %p2558_p9, %p2557_p5 }
 0x20c   : > { %p2560_p6 = pnand %p2559_p0, %p2553_p4 }
 0x20e   : > { %2563 = shalt.err (!%p2560_p6)
}
 0x20f   : > { %s2564_s1 = scalar_lea.hbm %s3144_s11, 1024  ;;  %s2568_s14 = scalar_lea.hbm %s3264_s4, 4096 }
 0x210   : > { %p2565_p8 = scmp.ne.s32.totalorder %s3144_s11, %s2564_s1  ;;  %p2569_p13 = scmp.lt.u32.totalorder %s3144_s11, %s3264_s4 }
 0x211   : > { %p2570_p3 = scmp.lt.u32.totalorder %s2568_s14, %s2564_s1  ;;  %p2572_p1 = scmp.lt.u32.totalorder %s2564_s1, %s3144_s11 }
 0x212   : > { %p2566_p10 = pnand %p2565_p8, %p2798_p11 }
 0x213   : > { %p2571_p7 = por %p2570_p3, %p2569_p13 }
 0x214   : > { %p2567_p12 = pneg %p2566_p10 }
 0x215   : > { %p2573_p2 = por %p2572_p1, %p2571_p7 }
 0x217   : > { %p2574_p4 = pnand %p2573_p2, %p2567_p12 }
 0x219   : > { %2577 = shalt.err (!%p2574_p4)
}
 0x21a   : > { %2242 = dma.vmem_to_hbm [thread:$0]  (%p2798_p11), %s3138_s29, 1024, %s3144_s11, %s3150_s18, %s2666_s9, %s2666_s9, %s2667_s13  }
 0x21b PF: > { %s3290_s8 = sld [smem:[#allocation16_spill]]  ;;  %p2267_p5 = scmp.ge.s32.totalorder %s2656_s22, 2 }
 0x21c   : > { %s1582_s12 = sand.u32 1, %s2628_s15  }
 0x21d   : > { %s1583_s19 = scalar_lea.sflag [#allocation4], %s1582_s12 }
 0x221   : > { %p3291_p9 = scmp.ne.s32.totalorder %s3290_s8, 0 }
 0x223   : > { %p2255_p0 = pnand %p2267_p5, %p3291_p9 }
 0x225   : > { %2619 = dma.done.wait (!%p2255_p0), %s1583_s19, 1024  }
 0x226   : > { %2621 = vsyncadd (!%p2255_p0), %s1583_s19, 4294966272  ;;  %s3292_s30 = sadd.s32 4294967294, %s2656_s22  }
 0x227   : > { %s1591_s10 = sand.u32 1, %s3292_s30  }
 0x228   : > { %s1592_s20 = scalar_lea.sflag [#allocation9], %s1591_s10 }
 0x229   : > { %2623 = dma.done.wait (!%p2255_p0), %s1592_s20, 2048  }
 0x22a   : > { %2625 = vsyncadd (!%p2255_p0), %s1592_s20, 4294965248  ;;  %s25_s22 = sadd.s32 1, %s2656_s22   ;;  %s3293_s18 = sld [smem:[#allocation15_spill]] }
 0x22b   : > { %p22_p11 = scmp.ge.s32.totalorder %s25_s22, 6   ;;  %s3294_s20 = sld [smem:[#allocation17_spill]] }
 0x22c   : > { %s3295_s29 = sld [smem:[#allocation18_spill]]  ;;  %s3296_s15 = smov %s2632_s16 }
 0x22d   : > { %s3297_s16 = smov %s2636_s17  ;;  %s3298_s17 = smov %s2815_s5 }
 0x22e   : > { %s3299_s19 = smov %s2652_s21  ;;  %24 = sbr.rel (!%p22_p11) target bundleno = 12 (0xc), region = 109 }
 0x232   : > { %s3300_s21 = smov %s3295_s29 }
 0x235   :  { %1606 = vsyncpa [#allocation3], 1 }
 0x236   :  { %1608 = vsyncpa [#allocation3 + $0x1], 1 }
 0x237   :  { %1609 = vsyncpa [#allocation6], 1 }
 0x238   :  { %1610 = vsyncpa [#allocation4], 1 }
 0x239   :  { %1612 = vsyncpa [#allocation4 + $0x1], 1 }
 0x23a   :  { %1613 = vsyncpa [#allocation9], 1 }
 0x23b   :  { %1615 = vsyncpa [#allocation9 + $0x1], 1 }

</bundles_post_ra>
